<compile_context>
chip_gen: v6e
topology: v6e:2x2x1
jax: 0.10.0
libtpu: 0.0.40
codegen_flags: <defaults>
</compile_context>

<pallas_src>
import jax
import jax.numpy as jnp
import numpy as np
from jax.experimental import pallas as pl
from jax.experimental.pallas import tpu as pltpu


def _build_banded_weight(weight, W):
    """torch conv weight (Co, Ci, 3, 3, 3) -> (9, W*Ci, W*Co) banded matrices.

    band[kd*3+kh, w_in*Ci+ci, w_out*Co+co] = weight[co, ci, kd, kh, w_in-w_out+1]
    when |w_in - w_out| <= 1, else 0.  The zero band outside the window is
    exactly the 'same' zero padding along W, so the encoder is never padded
    (and never sliced) along W at all.
    """
    Co, Ci, _, _, _ = weight.shape
    w_k = jnp.transpose(weight, (2, 3, 4, 1, 0))            # (kd, kh, kw, Ci, Co)
    band = jnp.zeros((3, 3, W, Ci, W, Co), dtype=weight.dtype)
    for w_out in range(W):
        for kw in range(3):
            w_in = w_out + kw - 1
            if 0 <= w_in < W:
                band = band.at[:, :, w_in, :, w_out, :].set(w_k[:, :, kw, :, :])
    return band.reshape(9, W * Ci, W * Co)


@jax.jit
def skip_sum_block(enc, dec, weight, bias):
    """out = relu(conv3d_same(enc; weight, bias) + dec); enc/dec/out are NCDHW."""
    N, C, D, H, W = enc.shape
    Co, Ci, KD, KH, KW = weight.shape
    assert (Ci, KD, KH, KW) == (C, 3, 3, 3) and Co == C and dec.shape == enc.shape

    WC = W * C                       # lane axis (128 at the test shape)
    Dp, Hp = D + 2, H + 2
    TD = 2 if D % 2 == 0 else 1      # depth rows per grid step (TD*H output rows)
    GD = D // TD

    # ---- host-side layout glue (fused under jit; all lane-dense afterwards) ----
    enc_cl = jnp.transpose(enc, (0, 2, 3, 4, 1)).reshape(N, D, H, WC)
    enc_pad = jnp.pad(enc_cl, ((0, 0), (1, 1), (1, 1), (0, 0)))   # D/H halo only
    dec_cl = jnp.transpose(dec, (0, 2, 3, 4, 1)).reshape(N, D * H, WC)
    w_band = _build_banded_weight(weight, W)                      # (9, WC, WC)
    b_wc = jnp.tile(bias, W).reshape(1, WC)                       # lane-dense bias

    def kernel(enc_ref, w_ref, b_ref, dec_ref, out_ref):
        dt = pl.program_id(1)
        d0 = dt * TD
        # One dynamic, leading-dim slice per step: (TD+2, Hp, WC) depth window.
        win = enc_ref[pl.ds(d0, TD + 2), :, :]
        acc = jnp.zeros((TD * H, WC), dtype=jnp.float32)
        for kd in range(3):
            for kh in range(3):
                slab = win[kd:kd + TD, kh:kh + H, :].reshape(TD * H, WC)
                acc = acc + jnp.dot(slab, w_ref[kd * 3 + kh],
                                    preferred_element_type=jnp.float32)
        acc = acc + b_ref[...] + dec_ref[...]
        out_ref[...] = jnp.maximum(acc, 0.0).astype(out_ref.dtype)

    out_cl = pl.pallas_call(
        kernel,
        out_shape=jax.ShapeDtypeStruct((N, D * H, WC), enc.dtype),
        grid=(N, GD),
        in_specs=[
            # Whole padded encoder volume of one batch element; block index is
            # constant over dt, so it stays VMEM-resident across the D tiles.
            pl.BlockSpec((None, Dp, Hp, WC), lambda n, dt: (n, 0, 0, 0)),
            pl.BlockSpec((9, WC, WC), lambda n, dt: (0, 0, 0)),   # resident band
            pl.BlockSpec((1, WC), lambda n, dt: (0, 0)),          # resident bias
            pl.BlockSpec((None, TD * H, WC), lambda n, dt: (n, dt, 0)),
        ],
        out_specs=pl.BlockSpec((None, TD * H, WC), lambda n, dt: (n, dt, 0)),
        compiler_params=pltpu.CompilerParams(
            dimension_semantics=("parallel", "arbitrary"),
            vmem_limit_bytes=32 * 1024 * 1024,
        ),
    )(enc_pad, w_band, b_wc, dec_cl)

    out = out_cl.reshape(N, D, H, W, C)
    return jnp.transpose(out, (0, 4, 1, 2, 3))  # back to NCDHW


def _reference(enc, dec, weight, bias):
    """Pure-JAX reference: relu(conv3d_same(enc) + dec) in NCDHW."""
    enc_cl = jnp.transpose(enc, (0, 2, 3, 4, 1))
    dec_cl = jnp.transpose(dec, (0, 2, 3, 4, 1))
    w_dhwio = jnp.transpose(weight, (2, 3, 4, 1, 0))
    conv = jax.lax.conv_general_dilated(
        enc_cl, w_dhwio, window_strides=(1, 1, 1), padding="SAME",
        dimension_numbers=("NDHWC", "DHWIO", "NDHWC"),
        precision=jax.lax.Precision.HIGHEST,
    )
    out = jnp.maximum(conv + bias.reshape(1, 1, 1, 1, -1) + dec_cl, 0.0)
    return jnp.transpose(out, (0, 4, 1, 2, 3))


if __name__ == "__main__":
    key = jax.random.PRNGKey(0)
    k_enc, k_dec, k_w, k_b = jax.random.split(key, 4)

    N, C, D, H, W = 2, 16, 8, 8, 8  # features = 16 -> W*C = 128 lanes

    enc = jax.random.normal(k_enc, (N, C, D, H, W), dtype=jnp.float32)
    dec = jax.random.normal(k_dec, (N, C, D, H, W), dtype=jnp.float32)

    # deterministic synthetic parameters (Kaiming-ish scale), torch conv layout
    w_std = float(np.sqrt(2.0 / (27 * C)))
    weight = jax.random.normal(k_w, (C, C, 3, 3, 3), dtype=jnp.float32) * w_std
    bias = jax.random.normal(k_b, (C,), dtype=jnp.float32) * 0.01

    out = skip_sum_block(enc, dec, weight, bias)
    out = jax.block_until_ready(out)

    ref = _reference(enc, dec, weight, bias)
    np.testing.assert_allclose(np.asarray(out), np.asarray(ref), rtol=1e-2, atol=1e-2)
    assert out.shape == (N, C, D, H, W) and out.dtype == enc.dtype

    print("KERNEL_OK")
</pallas_src>

<mosaic_0001>
module attributes {stable_mosaic.version = 11 : i64} {
  func.func @kernel(%arg0: i32, %arg1: i32, %arg2: memref<1x10x10x128xf32, #tpu.memory_space<vmem>>, %arg3: memref<9x128x128xf32, #tpu.memory_space<vmem>>, %arg4: memref<1x128xf32, #tpu.memory_space<vmem>>, %arg5: memref<1x16x128xf32, #tpu.memory_space<vmem>>, %arg6: memref<1x16x128xf32, #tpu.memory_space<vmem>>) attributes {dimension_semantics = [#tpu.dimension_semantics<parallel>, #tpu.dimension_semantics<arbitrary>], iteration_bounds = array<i64: 2, 4>, scalar_prefetch = 0 : i64, scratch_operands = 0 : i64, tpu.core_type = #tpu.core_type<tc>, window_params = [{transform_indices = @transform_0, window_bounds = array<i64: 1, 10, 10, 128>}, {pipeline_mode = #tpu.pipeline_mode<synchronous>, transform_indices = @transform_1, window_bounds = array<i64: 9, 128, 128>}, {pipeline_mode = #tpu.pipeline_mode<synchronous>, transform_indices = @transform_2, window_bounds = array<i64: 1, 128>}, {transform_indices = @transform_3, window_bounds = array<i64: 1, 16, 128>}, {transform_indices = @transform_4, window_bounds = array<i64: 1, 16, 128>}]} {
    %c2_i32 = arith.constant 2 : i32
    %0 = arith.muli %arg1, %c2_i32 : i32
    %c0 = arith.constant 0 : index
    %1 = arith.index_cast %0 : i32 to index
    %c0_0 = arith.constant 0 : index
    %c0_1 = arith.constant 0 : index
    %2 = vector.load %arg2[%c0, %1, %c0_0, %c0_1] : memref<1x10x10x128xf32, #tpu.memory_space<vmem>>, vector<1x4x10x128xf32>
    %3 = vector.shape_cast %2 : vector<1x4x10x128xf32> to vector<4x10x128xf32>
    %cst = arith.constant 0.000000e+00 : f32
    %4 = vector.broadcast %cst : f32 to vector<16x128xf32>
    %5 = vector.extract_strided_slice %3 {offsets = [0, 0, 0], sizes = [2, 8, 128], strides = [1, 1, 1]} : vector<4x10x128xf32> to vector<2x8x128xf32>
    %6 = vector.shape_cast %5 : vector<2x8x128xf32> to vector<16x128xf32>
    %c0_2 = arith.constant 0 : index
    %c0_3 = arith.constant 0 : index
    %c0_4 = arith.constant 0 : index
    %7 = vector.load %arg3[%c0_2, %c0_3, %c0_4] : memref<9x128x128xf32, #tpu.memory_space<vmem>>, vector<1x128x128xf32>
    %8 = vector.shape_cast %7 : vector<1x128x128xf32> to vector<128x128xf32>
    %cst_5 = arith.constant dense<0.000000e+00> : vector<16x128xf32>
    %9 = tpu.matmul %6, %8, %cst_5 {dimension_numbers = #tpu.dot_dimension_numbers<[1], [0], [0], [1], [0, 0, 1, 1], [], []>} : vector<16x128xf32>, vector<128x128xf32>, vector<16x128xf32> -> vector<16x128xf32>
    %10 = arith.addf %4, %9 : vector<16x128xf32>
    %11 = vector.extract_strided_slice %3 {offsets = [0, 1, 0], sizes = [2, 8, 128], strides = [1, 1, 1]} : vector<4x10x128xf32> to vector<2x8x128xf32>
    %12 = vector.shape_cast %11 : vector<2x8x128xf32> to vector<16x128xf32>
    %c1 = arith.constant 1 : index
    %c0_6 = arith.constant 0 : index
    %c0_7 = arith.constant 0 : index
    %13 = vector.load %arg3[%c1, %c0_6, %c0_7] : memref<9x128x128xf32, #tpu.memory_space<vmem>>, vector<1x128x128xf32>
    %14 = vector.shape_cast %13 : vector<1x128x128xf32> to vector<128x128xf32>
    %cst_8 = arith.constant dense<0.000000e+00> : vector<16x128xf32>
    %15 = tpu.matmul %12, %14, %cst_8 {dimension_numbers = #tpu.dot_dimension_numbers<[1], [0], [0], [1], [0, 0, 1, 1], [], []>} : vector<16x128xf32>, vector<128x128xf32>, vector<16x128xf32> -> vector<16x128xf32>
    %16 = arith.addf %10, %15 : vector<16x128xf32>
    %17 = vector.extract_strided_slice %3 {offsets = [0, 2, 0], sizes = [2, 8, 128], strides = [1, 1, 1]} : vector<4x10x128xf32> to vector<2x8x128xf32>
    %18 = vector.shape_cast %17 : vector<2x8x128xf32> to vector<16x128xf32>
    %c2 = arith.constant 2 : index
    %c0_9 = arith.constant 0 : index
    %c0_10 = arith.constant 0 : index
    %19 = vector.load %arg3[%c2, %c0_9, %c0_10] : memref<9x128x128xf32, #tpu.memory_space<vmem>>, vector<1x128x128xf32>
    %20 = vector.shape_cast %19 : vector<1x128x128xf32> to vector<128x128xf32>
    %cst_11 = arith.constant dense<0.000000e+00> : vector<16x128xf32>
    %21 = tpu.matmul %18, %20, %cst_11 {dimension_numbers = #tpu.dot_dimension_numbers<[1], [0], [0], [1], [0, 0, 1, 1], [], []>} : vector<16x128xf32>, vector<128x128xf32>, vector<16x128xf32> -> vector<16x128xf32>
    %22 = arith.addf %16, %21 : vector<16x128xf32>
    %23 = vector.extract_strided_slice %3 {offsets = [1, 0, 0], sizes = [2, 8, 128], strides = [1, 1, 1]} : vector<4x10x128xf32> to vector<2x8x128xf32>
    %24 = vector.shape_cast %23 : vector<2x8x128xf32> to vector<16x128xf32>
    %c3 = arith.constant 3 : index
    %c0_12 = arith.constant 0 : index
    %c0_13 = arith.constant 0 : index
    %25 = vector.load %arg3[%c3, %c0_12, %c0_13] : memref<9x128x128xf32, #tpu.memory_space<vmem>>, vector<1x128x128xf32>
    %26 = vector.shape_cast %25 : vector<1x128x128xf32> to vector<128x128xf32>
    %cst_14 = arith.constant dense<0.000000e+00> : vector<16x128xf32>
    %27 = tpu.matmul %24, %26, %cst_14 {dimension_numbers = #tpu.dot_dimension_numbers<[1], [0], [0], [1], [0, 0, 1, 1], [], []>} : vector<16x128xf32>, vector<128x128xf32>, vector<16x128xf32> -> vector<16x128xf32>
    %28 = arith.addf %22, %27 : vector<16x128xf32>
    %29 = vector.extract_strided_slice %3 {offsets = [1, 1, 0], sizes = [2, 8, 128], strides = [1, 1, 1]} : vector<4x10x128xf32> to vector<2x8x128xf32>
    %30 = vector.shape_cast %29 : vector<2x8x128xf32> to vector<16x128xf32>
    %c4 = arith.constant 4 : index
    %c0_15 = arith.constant 0 : index
    %c0_16 = arith.constant 0 : index
    %31 = vector.load %arg3[%c4, %c0_15, %c0_16] : memref<9x128x128xf32, #tpu.memory_space<vmem>>, vector<1x128x128xf32>
    %32 = vector.shape_cast %31 : vector<1x128x128xf32> to vector<128x128xf32>
    %cst_17 = arith.constant dense<0.000000e+00> : vector<16x128xf32>
    %33 = tpu.matmul %30, %32, %cst_17 {dimension_numbers = #tpu.dot_dimension_numbers<[1], [0], [0], [1], [0, 0, 1, 1], [], []>} : vector<16x128xf32>, vector<128x128xf32>, vector<16x128xf32> -> vector<16x128xf32>
    %34 = arith.addf %28, %33 : vector<16x128xf32>
    %35 = vector.extract_strided_slice %3 {offsets = [1, 2, 0], sizes = [2, 8, 128], strides = [1, 1, 1]} : vector<4x10x128xf32> to vector<2x8x128xf32>
    %36 = vector.shape_cast %35 : vector<2x8x128xf32> to vector<16x128xf32>
    %c5 = arith.constant 5 : index
    %c0_18 = arith.constant 0 : index
    %c0_19 = arith.constant 0 : index
    %37 = vector.load %arg3[%c5, %c0_18, %c0_19] : memref<9x128x128xf32, #tpu.memory_space<vmem>>, vector<1x128x128xf32>
    %38 = vector.shape_cast %37 : vector<1x128x128xf32> to vector<128x128xf32>
    %cst_20 = arith.constant dense<0.000000e+00> : vector<16x128xf32>
    %39 = tpu.matmul %36, %38, %cst_20 {dimension_numbers = #tpu.dot_dimension_numbers<[1], [0], [0], [1], [0, 0, 1, 1], [], []>} : vector<16x128xf32>, vector<128x128xf32>, vector<16x128xf32> -> vector<16x128xf32>
    %40 = arith.addf %34, %39 : vector<16x128xf32>
    %41 = vector.extract_strided_slice %3 {offsets = [2, 0, 0], sizes = [2, 8, 128], strides = [1, 1, 1]} : vector<4x10x128xf32> to vector<2x8x128xf32>
    %42 = vector.shape_cast %41 : vector<2x8x128xf32> to vector<16x128xf32>
    %c6 = arith.constant 6 : index
    %c0_21 = arith.constant 0 : index
    %c0_22 = arith.constant 0 : index
    %43 = vector.load %arg3[%c6, %c0_21, %c0_22] : memref<9x128x128xf32, #tpu.memory_space<vmem>>, vector<1x128x128xf32>
    %44 = vector.shape_cast %43 : vector<1x128x128xf32> to vector<128x128xf32>
    %cst_23 = arith.constant dense<0.000000e+00> : vector<16x128xf32>
    %45 = tpu.matmul %42, %44, %cst_23 {dimension_numbers = #tpu.dot_dimension_numbers<[1], [0], [0], [1], [0, 0, 1, 1], [], []>} : vector<16x128xf32>, vector<128x128xf32>, vector<16x128xf32> -> vector<16x128xf32>
    %46 = arith.addf %40, %45 : vector<16x128xf32>
    %47 = vector.extract_strided_slice %3 {offsets = [2, 1, 0], sizes = [2, 8, 128], strides = [1, 1, 1]} : vector<4x10x128xf32> to vector<2x8x128xf32>
    %48 = vector.shape_cast %47 : vector<2x8x128xf32> to vector<16x128xf32>
    %c7 = arith.constant 7 : index
    %c0_24 = arith.constant 0 : index
    %c0_25 = arith.constant 0 : index
    %49 = vector.load %arg3[%c7, %c0_24, %c0_25] : memref<9x128x128xf32, #tpu.memory_space<vmem>>, vector<1x128x128xf32>
    %50 = vector.shape_cast %49 : vector<1x128x128xf32> to vector<128x128xf32>
    %cst_26 = arith.constant dense<0.000000e+00> : vector<16x128xf32>
    %51 = tpu.matmul %48, %50, %cst_26 {dimension_numbers = #tpu.dot_dimension_numbers<[1], [0], [0], [1], [0, 0, 1, 1], [], []>} : vector<16x128xf32>, vector<128x128xf32>, vector<16x128xf32> -> vector<16x128xf32>
    %52 = arith.addf %46, %51 : vector<16x128xf32>
    %53 = vector.extract_strided_slice %3 {offsets = [2, 2, 0], sizes = [2, 8, 128], strides = [1, 1, 1]} : vector<4x10x128xf32> to vector<2x8x128xf32>
    %54 = vector.shape_cast %53 : vector<2x8x128xf32> to vector<16x128xf32>
    %c8 = arith.constant 8 : index
    %c0_27 = arith.constant 0 : index
    %c0_28 = arith.constant 0 : index
    %55 = vector.load %arg3[%c8, %c0_27, %c0_28] : memref<9x128x128xf32, #tpu.memory_space<vmem>>, vector<1x128x128xf32>
    %56 = vector.shape_cast %55 : vector<1x128x128xf32> to vector<128x128xf32>
    %cst_29 = arith.constant dense<0.000000e+00> : vector<16x128xf32>
    %57 = tpu.matmul %54, %56, %cst_29 {dimension_numbers = #tpu.dot_dimension_numbers<[1], [0], [0], [1], [0, 0, 1, 1], [], []>} : vector<16x128xf32>, vector<128x128xf32>, vector<16x128xf32> -> vector<16x128xf32>
    %58 = arith.addf %52, %57 : vector<16x128xf32>
    %c0_30 = arith.constant 0 : index
    %c0_31 = arith.constant 0 : index
    %59 = vector.load %arg4[%c0_30, %c0_31] : memref<1x128xf32, #tpu.memory_space<vmem>>, vector<1x128xf32>
    %60 = vector.broadcast %59 : vector<1x128xf32> to vector<16x128xf32>
    %61 = arith.addf %58, %60 : vector<16x128xf32>
    %c0_32 = arith.constant 0 : index
    %c0_33 = arith.constant 0 : index
    %c0_34 = arith.constant 0 : index
    %62 = vector.load %arg5[%c0_32, %c0_33, %c0_34] : memref<1x16x128xf32, #tpu.memory_space<vmem>>, vector<1x16x128xf32>
    %63 = vector.shape_cast %62 : vector<1x16x128xf32> to vector<16x128xf32>
    %64 = arith.addf %61, %63 : vector<16x128xf32>
    %cst_35 = arith.constant 0.000000e+00 : f32
    %65 = vector.broadcast %cst_35 : f32 to vector<16x128xf32>
    %66 = arith.maximumf %64, %65 : vector<16x128xf32>
    %c0_36 = arith.constant 0 : index
    %c0_37 = arith.constant 0 : index
    %c0_38 = arith.constant 0 : index
    %67 = vector.load %arg6[%c0_36, %c0_37, %c0_38] : memref<1x16x128xf32, #tpu.memory_space<vmem>>, vector<1x16x128xf32>
    %68 = vector.shape_cast %67 : vector<1x16x128xf32> to vector<16x128xf32>
    %69 = vector.shape_cast %66 : vector<16x128xf32> to vector<1x16x128xf32>
    tpu.vector_store %arg6[%c0_36, %c0_37, %c0_38], %69 {strides = array<i32>} : memref<1x16x128xf32, #tpu.memory_space<vmem>>, vector<1x16x128xf32>,
    return
  }
  func.func @transform_0(%arg0: i32, %arg1: i32) -> (i32, i32, i32, i32) {
    %c0_i32 = arith.constant 0 : i32
    %c0_i32_0 = arith.constant 0 : i32
    %c0_i32_1 = arith.constant 0 : i32
    %c0_i32_2 = arith.constant 0 : i32
    return %arg0, %c0_i32, %c0_i32_0, %c0_i32_1 : i32, i32, i32, i32
  }
  func.func @transform_1(%arg0: i32, %arg1: i32) -> (i32, i32, i32) {
    %c0_i32 = arith.constant 0 : i32
    %c0_i32_0 = arith.constant 0 : i32
    %c0_i32_1 = arith.constant 0 : i32
    %c0_i32_2 = arith.constant 0 : i32
    return %c0_i32, %c0_i32_0, %c0_i32_1 : i32, i32, i32
  }
  func.func @transform_2(%arg0: i32, %arg1: i32) -> (i32, i32) {
    %c0_i32 = arith.constant 0 : i32
    %c0_i32_0 = arith.constant 0 : i32
    %c0_i32_1 = arith.constant 0 : i32
    return %c0_i32, %c0_i32_0 : i32, i32
  }
  func.func @transform_3(%arg0: i32, %arg1: i32) -> (i32, i32, i32) {
    %c0_i32 = arith.constant 0 : i32
    %c0_i32_0 = arith.constant 0 : i32
    return %arg0, %arg1, %c0_i32 : i32, i32, i32
  }
  func.func @transform_4(%arg0: i32, %arg1: i32) -> (i32, i32, i32) {
    %c0_i32 = arith.constant 0 : i32
    %c0_i32_0 = arith.constant 0 : i32
    return %arg0, %arg1, %c0_i32 : i32, i32, i32
  }
}

</mosaic_0001>

<bundles_post_ra>
// kernel: tile.8
= control target key start
LH: loop header
LB: loop body
LE: loop exit
PB: predicated region body
PF: predicated region fallthrough
CT: control target
= control target key end

     0   :  { %s22_s0 = inlined_call_operand.vmem [shape: f32[16], index: 0, kind: input, shape index: {}]   ;;  %s23_s1 = inlined_call_operand.vmem [shape: f32[8,16], index: 1, kind: output, shape index: {}]  }
   0x1   :  { %v4_v0 = vld [vmem:[%s22_s0] ss:$0 sm:$0xff] }
   0x2   :  { %5 = vst [vmem:[%s23_s1] sm:$0xff] %v4_v0 }

// kernel: tile.9
= control target key start
LH: loop header
LB: loop body
LE: loop exit
PB: predicated region body
PF: predicated region fallthrough
CT: control target
= control target key end

     0   :  { %s69_s10 = smov 112   ;;  %s70_s11 = smov 80   ;;  %vm3_vm0 = vcmask 130048   ;;  %vm9_vm1 = vcmask 1048448   ;;  %vm15_vm2 = vcmask 917248   ;;  %vm21_vm3 = vcmask 786048   ;;  %s113_s0 = inlined_call_operand.vmem [shape: f32[8,16], index: 0, kind: input, shape index: {}]   ;;  %s114_s1 = inlined_call_operand.vmem [shape: f32[1,128], index: 1, kind: output, shape index: {}]  }
   0x1   :  { %v55_v0 = vld [vmem:[%s113_s0 + $0x7] sm:$0x1]   ;;  %v57_v1 = vld [vmem:[%s113_s0 + $0x5] sm:$0x1]   ;;  %v56_v2 = vld [vmem:[%s113_s0 + $0x6] sm:$0x1]  }
   0x2   :  { %7 = vrot.lane.b32.xlu0 %v55_v0, %s69_s10  ;;  %19 = vrot.lane.b32.xlu1 %v57_v1, %s70_s11  ;;  %v58_v3 = vld [vmem:[%s113_s0 + $0x4] sm:$0x1]   ;;  %v2_v4 = vld [vmem:[%s113_s0] sm:$0x1]   ;;  %s71_s18 = smov 96   ;;  %s72_s19 = smov 64  }
   0x3   :  { %4 = vst.msk [vmem:[#allocation0] sm:$0x1] %vm3_vm0, %v2_v4   ;;  %v59_v5 = vld [vmem:[%s113_s0 + $0x3] sm:$0x1]   ;;  %v60_v6 = vld [vmem:[%s113_s0 + $0x2] sm:$0x1]  }
   0x4   :  { %s73_s24 = smov 48   ;;  %s74_s25 = smov 32   ;;  %v61_v7 = vld [vmem:[%s113_s0 + $0x1] sm:$0x1]   ;;  %vm27_vm4 = vcmask 654848   ;;  %vm33_vm5 = vcmask 523648  }
   0x5   :  { %s75_s0 = smov 16   ;;  %vm39_vm6 = vcmask 392448   ;;  %vm45_vm7 = vcmask 261248  }
   0x6   :  { %13 = vrot.lane.b32.xlu0 %v56_v2, %s71_s18  ;;  %25 = vrot.lane.b32.xlu1 %v58_v3, %s72_s19 }
   0xa   :  { %31 = vrot.lane.b32.xlu0 %v59_v5, %s73_s24  ;;  %37 = vrot.lane.b32.xlu1 %v60_v6, %s74_s25 }
   0xe   :  { %43 = vrot.lane.b32.xlu0 %v61_v7, %s75_s0 }
  0x74   :  { %v8_v8 = vpop.permute.xlu0 %7   ;;  %v20_v9 = vpop.permute.xlu1 %19  }
  0x75   :  { %10 = vst.msk [vmem:[#allocation0] sm:$0x1] %vm9_vm1, %v8_v8  }
  0x78   :  { %v14_v10 = vpop.permute.xlu0 %13   ;;  %v26_v11 = vpop.permute.xlu1 %25  }
  0x79   :  { %16 = vst.msk [vmem:[#allocation0] sm:$0x1] %vm15_vm2, %v14_v10  }
  0x7a   :  { %22 = vst.msk [vmem:[#allocation0] sm:$0x1] %vm21_vm3, %v20_v9  }
  0x7b   :  { %28 = vst.msk [vmem:[#allocation0] sm:$0x1] %vm27_vm4, %v26_v11  }
  0x7c   :  { %v32_v12 = vpop.permute.xlu0 %31   ;;  %v38_v13 = vpop.permute.xlu1 %37  }
  0x7d   :  { %34 = vst.msk [vmem:[#allocation0] sm:$0x1] %vm33_vm5, %v32_v12  }
  0x7e   :  { %40 = vst.msk [vmem:[#allocation0] sm:$0x1] %vm39_vm6, %v38_v13  }
  0x80   :  { %v44_v14 = vpop.permute.xlu0 %43  }
  0x81   :  { %46 = vst.msk [vmem:[#allocation0] sm:$0x1] %vm45_vm7, %v44_v14  }
  0x88   :  { %v51_v15 = vld [vmem:[#allocation0] sm:$0x1] }
  0x89   :  { %54 = vst [vmem:[%s114_s1] sm:$0x1] %v51_v15 }

// kernel: skip_sum_block.1
= control target key start
LH: loop header
LB: loop body
LE: loop exit
PB: predicated region body
PF: predicated region fallthrough
CT: control target
= control target key end

     0   :  { %s2001_s15 = smov 0   ;;  %s2003_s16 = smov 0   ;;  %s2576_s0 = inlined_call_operand.vmem [shape: f32[2,10,10,128], index: 0, kind: input, shape index: {}]   ;;  %s2577_s1 = inlined_call_operand.vmem [shape: f32[9,128,128], index: 1, kind: input, shape index: {}]   ;;  %s2578_s2 = inlined_call_operand.vmem [shape: f32[1,128], index: 2, kind: input, shape index: {}]   ;;  %s2579_s3 = inlined_call_operand.vmem [shape: f32[2,64,128], index: 3, kind: input, shape index: {}]   ;;  %s2580_s4 = inlined_call_operand.vmem [shape: f32[2,64,128], index: 4, kind: output, shape index: {}]  }
   0x1   :  { %s2005_s17 = smov 0   ;;  %s2007_s18 = smov 0  }
   0x2   :  { %s2009_s19 = smov 0  }
   0x3 LB: > { %s23_s20 = sadd.s32 1, %s1966_s17  ;;  %s26_s21 = sadd.s32 1, %s1970_s18  ;;  %s1974_s19 = sphi %s2009_s19, %s14_s19   ;;  %s1970_s18 = sphi %s2007_s18, %s2584_s18   ;;  %s1966_s17 = sphi %s2005_s17, %s2583_s17   ;;  %s1962_s16 = sphi %s2003_s16, %s2582_s16   ;;  %s1958_s15 = sphi %s2001_s15, %s2581_s15  }
   0x4   : > { %p24_p0 = scmp.ge.s32.totalorder %s23_s20, 4  ;;  %p1276_p1 = scmp.ge.s32.totalorder %s1974_s19, 1 }
   0x5   : > { %p193_p2 = scmp.lt.s32.totalorder %s1974_s19, 9 }
   0x6   : > { %s2586_s20 = smov (%p24_p0, %s23_s20), 0  ;;  %s2588_s21 = smov (!%p24_p0, %s26_s21), %s1970_s18 }
   0x7   : > { %p194_p3 = pnand %p1276_p1, %p193_p2  ;;  %p28_p4 = scmp.ge.s32.totalorder %s2588_s21, 2 }
   0x8   : > { %p232_p5 = scmp.lt.s32.totalorder (!%p194_p3), %s1962_s16, 1  ;;  %s1417_s28 = sshll.u32 (!%p194_p3), %s1958_s15, 5 }
   0x9   : > { %s2590_s21 = smov (%p28_p4, %s2588_s21), 0  ;;  %197 = sbr.rel (%p194_p3) target bundleno = 386 (0x182), region = 36 }
   0xe   : > { %v1301_v0 = vld [vmem:[%s2577_s1 + $0xf8] sm:$0xff]  ;;  %v1300_v2 = vld [vmem:[%s2577_s1 + $0xf0] sm:$0xff]  ;;  %v1299_v4 = vld [vmem:[%s2577_s1 + $0xe8] sm:$0xff]  ;;  %s2592_s16 = smov (!%p232_p5, %s1962_s16), 1  ;;  %vm288_vm0 = vcmask 1046528   ;;  %vm464_vm1 = vcmask 1045504  }
   0xf   : > { %v283_v1 = vld [vmem:[%s2577_s1 + $0x78] sm:$0xff]  ;;  %1580 = vmatprep.subr.mxu0 %v1301_v0  ;;  %v282_v3 = vld [vmem:[%s2577_s1 + $0x70] sm:$0xff]  ;;  %v281_v5 = vld [vmem:[%s2577_s1 + $0x68] sm:$0xff]  ;;  %s1895_s9 = smul.u32 160, %s2592_s16  ;;  %s1279_s8 = sshll.u32 %s2592_s16, 3 }
  0x10   : > { %1615 = vmatprep.subr.mxu1 %v283_v1  ;;  %1581 = vmatpush3.msra.mxu0 %v1301_v0  ;;  %v1298_v6 = vld [vmem:[%s2577_s1 + $0xe0] sm:$0xff]  ;;  %v1297_v8 = vld [vmem:[%s2577_s1 + $0xd8] sm:$0xff]  ;;  %v1296_v10 = vld [vmem:[%s2577_s1 + $0xd0] sm:$0xff] }
  0x11   : > { %1616 = vmatpush3.msra.mxu1 %v283_v1  ;;  %1582 = vmatprep.subr.mxu0 %v1300_v2  ;;  %v280_v7 = vld [vmem:[%s2577_s1 + $0x60] sm:$0xff]  ;;  %v279_v9 = vld [vmem:[%s2577_s1 + $0x58] sm:$0xff]  ;;  %v278_v11 = vld [vmem:[%s2577_s1 + $0x50] sm:$0xff]  ;;  %s236_s27 = scalar_lea.vmem %s2576_s0, %s1895_s9 }
  0x12   : > { %1617 = vmatprep.subr.mxu1 %v282_v3  ;;  %1583 = vmatpush3.msra.mxu0 %v1300_v2  ;;  %v1295_v12 = vld [vmem:[%s2577_s1 + $0xc8] sm:$0xff]  ;;  %v1294_v14 = vld [vmem:[%s2577_s1 + $0xc0] sm:$0xff]  ;;  %v1293_v16 = vld [vmem:[%s2577_s1 + $0xb8] sm:$0xff]  ;;  %s2110_s7 = scalar_lea.vmem %s236_s27, %s1417_s28 }
  0x13   : > { %1618 = vmatpush3.msra.mxu1 %v282_v3  ;;  %1584 = vmatprep.subr.mxu0 %v1299_v4  ;;  %v277_v13 = vld [vmem:[%s2577_s1 + $0x48] sm:$0xff]  ;;  %v276_v15 = vld [vmem:[%s2577_s1 + $0x40] sm:$0xff]  ;;  %v275_v17 = vld [vmem:[%s2577_s1 + $0x38] sm:$0xff] }
  0x14   : > { %1619 = vmatprep.subr.mxu1 %v281_v5  ;;  %1585 = vmatpush3.msra.mxu0 %v1299_v4  ;;  %v1292_v18 = vld [vmem:[%s2577_s1 + $0xb0] sm:$0xff]  ;;  %v1291_v20 = vld [vmem:[%s2577_s1 + $0xa8] sm:$0xff]  ;;  %v1290_v22 = vld [vmem:[%s2577_s1 + $0xa0] sm:$0xff] }
  0x15   : > { %1620 = vmatpush3.msra.mxu1 %v281_v5  ;;  %1586 = vmatprep.subr.mxu0 %v1298_v6  ;;  %v274_v19 = vld [vmem:[%s2577_s1 + $0x30] sm:$0xff]  ;;  %v273_v21 = vld [vmem:[%s2577_s1 + $0x28] sm:$0xff]  ;;  %v272_v23 = vld [vmem:[%s2577_s1 + $0x20] sm:$0xff] }
  0x16   : > { %1621 = vmatprep.subr.mxu1 %v280_v7  ;;  %1587 = vmatpush3.msra.mxu0 %v1298_v6  ;;  %v1289_v24 = vld [vmem:[%s2577_s1 + $0x98] sm:$0xff]  ;;  %v2125_v26 = vld [vmem:[%s2110_s7] sm:$0xff]  ;;  %v2128_v27 = vld [vmem:[%s2110_s7 + $0x8] sm:$0x3] }
  0x17   : > { %1622 = vmatpush3.msra.mxu1 %v280_v7  ;;  %1588 = vmatprep.subr.mxu0 %v1297_v8  ;;  %v271_v25 = vld [vmem:[%s2577_s1 + $0x18] sm:$0xff]  ;;  %v1288_v28 = vld [vmem:[%s2577_s1 + $0x90] sm:$0xff]  ;;  %v289_v32 = vrot.slane %v2125_v26, 1  ;;  %v290_v33 = vrot.slane %v2128_v27, 1  ;;  %v1287_v34 = vld [vmem:[%s2577_s1 + $0x88] sm:$0xff] }
  0x18   : > { %1623 = vmatprep.subr.mxu1 %v279_v9  ;;  %1589 = vmatpush3.msra.mxu0 %v1297_v8  ;;  %v270_v29 = vld [vmem:[%s2577_s1 + $0x10] sm:$0xff]  ;;  %v2140_v31 = vld [vmem:[%s2110_s7 + $0x18] sm:$0x3]  ;;  %v269_v35 = vld [vmem:[%s2577_s1 + $0x8] sm:$0xff] }
  0x19   : > { %1624 = vmatpush3.msra.mxu1 %v279_v9  ;;  %1590 = vmatprep.subr.mxu0 %v1296_v10  ;;  %v2137_v30 = vld [vmem:[%s2110_s7 + $0x10] sm:$0xff]  ;;  %v293_v37 = vrot.slane %v2140_v31, 1  ;;  %v1286_v38 = vld [vmem:[%s2577_s1 + $0x80] sm:$0xff]  ;;  %v291_v40 = vsel %vm288_vm0, %v289_v32, %v290_v33  ;;  %v1317_v43 = vld [vmem:[%s2577_s1 + $0x178] sm:$0xff] }
  0x1a   : > { %1625 = vmatprep.subr.mxu1 %v278_v11  ;;  %1591 = vmatpush3.msra.mxu0 %v1296_v10  ;;  %v292_v36 = vrot.slane %v2137_v30, 1  ;;  %v268_v39 = vld [vmem:[%s2577_s1] sm:$0xff]  ;;  %v1333_v44 = vld [vmem:[%s2577_s1 + $0x1f8] sm:$0xff]  ;;  %v2174_v46 = vld [vmem:[%s2110_s7 + $0x28] sm:$0x3] }
  0x1b   : > { %1626 = vmatpush3.msra.mxu1 %v278_v11  ;;  %1592 = vmatprep.subr.mxu0 %v1295_v12  ;;  %v2163_v42 = vld [vmem:[%s2110_s7 + $0x20] sm:$0xff]  ;;  %v1316_v47 = vld [vmem:[%s2577_s1 + $0x170] sm:$0xff]  ;;  %v664_v49 = vrot.slane %v2174_v46, 1  ;;  %v1315_v50 = vld [vmem:[%s2577_s1 + $0x168] sm:$0xff] }
  0x1c   : > { %1627 = vmatprep.subr.mxu1 %v277_v13  ;;  %1593 = vmatpush3.msra.mxu0 %v1295_v12  ;;  %v2160_v41 = vsel %vm288_vm0, %v292_v36, %v293_v37  ;;  %v663_v45 = vrot.slane %v2163_v42, 1  ;;  %v1332_v48 = vld [vmem:[%s2577_s1 + $0x1f0] sm:$0xff]  ;;  %v1331_v51 = vld [vmem:[%s2577_s1 + $0x1e8] sm:$0xff]  ;;  %v1314_v53 = vld [vmem:[%s2577_s1 + $0x160] sm:$0xff] }
  0x1d   : > { %1628 = vmatpush3.msra.mxu1 %v277_v13  ;;  %1594 = vmatprep.subr.mxu0 %v1294_v14  ;;  %v1330_v54 = vld [vmem:[%s2577_s1 + $0x1e0] sm:$0xff]  ;;  %v1313_v55 = vld [vmem:[%s2577_s1 + $0x158] sm:$0xff]  ;;  %v1312_v57 = vld [vmem:[%s2577_s1 + $0x150] sm:$0xff] }
  0x1e   : > { %1629 = vmatprep.subr.mxu1 %v276_v15  ;;  %1595 = vmatpush3.msra.mxu0 %v1294_v14  ;;  %v2192_v52 = vsel %vm288_vm0, %v663_v45, %v664_v49  ;;  %v1329_v56 = vld [vmem:[%s2577_s1 + $0x1d8] sm:$0xff]  ;;  %v1328_v58 = vld [vmem:[%s2577_s1 + $0x1d0] sm:$0xff]  ;;  %v1311_v59 = vld [vmem:[%s2577_s1 + $0x148] sm:$0xff] }
  0x1f   : > { %1630 = vmatpush3.msra.mxu1 %v276_v15  ;;  %1596 = vmatprep.subr.mxu0 %v1293_v16  ;;  %v1327_v60 = vld [vmem:[%s2577_s1 + $0x1c8] sm:$0xff]  ;;  %v2219_v61 = vld [vmem:[%s2110_s7 + $0x30] sm:$0xff]  ;;  %v267_v0 = vld [vmem:[%s2110_s7 + $0x38] sm:$0x3]  ;;  %s1278_s7 = sshll.u32 %s1958_s15, 1 }
  0x20   : > { %1631 = vmatprep.subr.mxu1 %v275_v17  ;;  %1597 = vmatpush3.msra.mxu0 %v1293_v16  ;;  %v955_v62 = vrot.slane %v2219_v61, 1  ;;  %v1053_v63 = vrot.slane %v2219_v61, 2  ;;  %v1310_v1 = vld [vmem:[%s2577_s1 + $0x140] sm:$0xff]  ;;  %v956_v3 = vrot.slane %v267_v0, 1  ;;  %v1054_v4 = vrot.slane %v267_v0, 2  ;;  %v1309_v5 = vld [vmem:[%s2577_s1 + $0x138] sm:$0xff] }
  0x21   : > { %1632 = vmatpush3.msra.mxu1 %v275_v17  ;;  %1598 = vmatprep.subr.mxu0 %v1292_v18  ;;  %v1326_v2 = vld [vmem:[%s2577_s1 + $0x1c0] sm:$0xff]  ;;  %v1325_v6 = vld [vmem:[%s2577_s1 + $0x1b8] sm:$0xff]  ;;  %v1308_v9 = vld [vmem:[%s2577_s1 + $0x130] sm:$0xff]  ;;  %v465_v17 = vrot.slane %v2125_v26, 2  ;;  %p240_p6 = scmp.lt.s32.totalorder %s1278_s7, 7 }
  0x22   : > { %1633 = vmatprep.subr.mxu1 %v274_v19  ;;  %1599 = vmatpush3.msra.mxu0 %v1292_v18  ;;  %v2237_v7 = vsel %vm288_vm0, %v955_v62, %v956_v3  ;;  %v2240_v8 = vsel %vm464_vm1, %v1053_v63, %v1054_v4  ;;  %v1324_v10 = vld [vmem:[%s2577_s1 + $0x1b0] sm:$0xff]  ;;  %v1307_v11 = vld [vmem:[%s2577_s1 + $0x128] sm:$0xff]  ;;  %v1306_v13 = vld [vmem:[%s2577_s1 + $0x120] sm:$0xff]  ;;  %v466_v18 = vrot.slane %v2128_v27, 2 }
  0x23   : > { %1634 = vmatpush3.msra.mxu1 %v274_v19  ;;  %1600 = vmatprep.subr.mxu0 %v1291_v20  ;;  %v1323_v12 = vld [vmem:[%s2577_s1 + $0x1a8] sm:$0xff]  ;;  %v1322_v14 = vld [vmem:[%s2577_s1 + $0x1a0] sm:$0xff]  ;;  %v1305_v15 = vld [vmem:[%s2577_s1 + $0x118] sm:$0xff]  ;;  %s2594_s7 = smov (!%p240_p6, %s1278_s7), 7 }
  0x24   : > { %1635 = vmatprep.subr.mxu1 %v273_v21  ;;  %1601 = vmatpush3.msra.mxu0 %v1291_v20  ;;  %v1321_v16 = vld [vmem:[%s2577_s1 + $0x198] sm:$0xff]  ;;  %v1304_v19 = vld [vmem:[%s2577_s1 + $0x110] sm:$0xff]  ;;  %v1318_v27 = vld [vmem:[%s2577_s1 + $0x180] sm:$0xff]  ;;  %s243_s9 = sadd.s32 %s1279_s8, %s2594_s7 }
  0x25   : > { %1636 = vmatpush3.msra.mxu1 %v273_v21  ;;  %1602 = vmatprep.subr.mxu0 %v1290_v22  ;;  %v1320_v20 = vld [vmem:[%s2577_s1 + $0x190] sm:$0xff]  ;;  %v1303_v21 = vld [vmem:[%s2577_s1 + $0x108] sm:$0xff]  ;;  %v1365_v32 = vld [vmem:[%s2577_s1 + $0x2f8] sm:$0xff]  ;;  %s1280_s15 = sshll.u32 %s243_s9, 3 }
  0x26   : > { %1637 = vmatprep.subr.mxu1 %v272_v23  ;;  %1603 = vmatpush3.msra.mxu0 %v1290_v22  ;;  %v1319_v22 = vld [vmem:[%s2577_s1 + $0x188] sm:$0xff]  ;;  %v1345_v36 = vld [vmem:[%s2577_s1 + $0x258] sm:$0xff]  ;;  %v1362_v37 = vld [vmem:[%s2577_s1 + $0x2e0] sm:$0xff]  ;;  %s245_s12 = scalar_lea.vmem %s2579_s3, %s1280_s15  ;;  %s255_s23 = scalar_lea.vmem %s2580_s4, %s1280_s15 }
  0x27   : > { %1638 = vmatpush3.msra.mxu1 %v272_v23  ;;  %1604 = vmatprep.subr.mxu0 %v1289_v24  ;;  %v468_v23 = vrot.slane %v2137_v30, 2  ;;  %v1347_v33 = vld [vmem:[%s2577_s1 + $0x268] sm:$0xff]  ;;  %v1340_v49 = vld [vmem:[%s2577_s1 + $0x230] sm:$0xff]  ;;  %v1334_v63 = vld [vmem:[%s2577_s1 + $0x200] sm:$0xff] }
  0x28   : > { %1639 = vmatprep.subr.mxu1 %v271_v25  ;;  %1605 = vmatpush3.msra.mxu0 %v1289_v24  ;;  %v469_v24 = vrot.slane %v2140_v31, 2  ;;  %v1348_v31 = vld [vmem:[%s2577_s1 + $0x270] sm:$0xff]  ;;  %v1359_v45 = vld [vmem:[%s2577_s1 + $0x2c8] sm:$0xff]  ;;  %v1350_v3 = vld [vmem:[%s2577_s1 + $0x280] sm:$0xff] }
  0x29   : > { %1640 = vmatpush3.msra.mxu1 %v271_v25  ;;  %1606 = vmatprep.subr.mxu0 %v1288_v28  ;;  %v467_v25 = vsel %vm464_vm1, %v465_v17, %v466_v18  ;;  %v1352_v62 = vld [vmem:[%s2577_s1 + $0x290] sm:$0xff]  ;;  %v1351_v0 = vld [vmem:[%s2577_s1 + $0x288] sm:$0xff]  ;;  %v1381_v4 = vld [vmem:[%s2577_s1 + $0x378] sm:$0xff] }
  0x2a   : > { %1641 = vmatprep.subr.mxu1 %v270_v29  ;;  %1607 = vmatpush3.msra.mxu0 %v1288_v28  ;;  %v2290_v28 = vsel %vm464_vm1, %v468_v23, %v469_v24  ;;  %v1392_v17 = vld [vmem:[%s2577_s1 + $0x3d0] sm:$0xff]  ;;  %v1374_v18 = vld [vmem:[%s2577_s1 + $0x340] sm:$0xff]  ;;  %v1389_v23 = vld [vmem:[%s2577_s1 + $0x3b8] sm:$0xff] }
  0x2b   : > { %1642 = vmatpush3.msra.mxu1 %v270_v29  ;;  %1608 = vmatprep.subr.mxu0 %v1287_v34  ;;  %v1349_v29 = vld [vmem:[%s2577_s1 + $0x278] sm:$0xff]  ;;  %v1371_v24 = vld [vmem:[%s2577_s1 + $0x328] sm:$0xff] }
  0x2c   : > { %1643 = vmatprep.subr.mxu1 %v269_v35  ;;  %1609 = vmatpush3.msra.mxu0 %v1287_v34  ;;  %v1364_v34 = vld [vmem:[%s2577_s1 + $0x2f0] sm:$0xff] }
  0x2d   : > { %1644 = vmatpush3.msra.mxu1 %v269_v35  ;;  %1610 = vmatprep.subr.mxu0 %v1286_v38  ;;  %v1346_v35 = vld [vmem:[%s2577_s1 + $0x260] sm:$0xff] }
  0x2e   : > { %1645 = vmatprep.subr.mxu1 %v268_v39  ;;  %1611 = vmatpush3.msra.mxu0 %v1286_v38  ;;  %v1344_v38 = vld [vmem:[%s2577_s1 + $0x250] sm:$0xff] }
  0x2f   : > { %1612 = vmatprep.mubr.f32.mxu0 %v291_v40  ;;  %1646 = vmatpush3.msra.mxu1 %v268_v39  ;;  %v1361_v39 = vld [vmem:[%s2577_s1 + $0x2d8] sm:$0xff]  ;;  %v1343_v40 = vld [vmem:[%s2577_s1 + $0x248] sm:$0xff] }
  0x30   : > { %1647 = vmatprep.mubr.f32.mxu1 %v2125_v26  ;;  %1613 = vmatmul.mubr.f32.vlgmr.msra.gmra.mxu0 %v2160_v41  ;;  %v1302_v26 = vld [vmem:[%s2577_s1 + $0x100] sm:$0xff] }
  0x31   : > { %1648 = vmatmul.mubr.f32.vlgmr.msra.gmra.mxu1 %v2137_v30  ;;  %1650 = vmatprep.subr.mxu0 %v1317_v43 }
  0x32   : > { %1685 = vmatprep.subr.mxu1 %v1333_v44  ;;  %1651 = vmatpush3.msra.mxu0 %v1317_v43  ;;  %v1360_v43 = vld [vmem:[%s2577_s1 + $0x2d0] sm:$0xff] }
  0x33   : > { %1686 = vmatpush3.msra.mxu1 %v1333_v44  ;;  %1652 = vmatprep.subr.mxu0 %v1316_v47  ;;  %v1342_v44 = vld [vmem:[%s2577_s1 + $0x240] sm:$0xff] }
  0x34   : > { %1687 = vmatprep.subr.mxu1 %v1332_v48  ;;  %1653 = vmatpush3.msra.mxu0 %v1316_v47  ;;  %v1341_v47 = vld [vmem:[%s2577_s1 + $0x238] sm:$0xff] }
  0x35   : > { %1688 = vmatpush3.msra.mxu1 %v1332_v48  ;;  %1654 = vmatprep.subr.mxu0 %v1315_v50  ;;  %v1358_v48 = vld [vmem:[%s2577_s1 + $0x2c0] sm:$0xff] }
  0x36   : > { %1689 = vmatprep.subr.mxu1 %v1331_v51  ;;  %1655 = vmatpush3.msra.mxu0 %v1315_v50  ;;  %v1357_v50 = vld [vmem:[%s2577_s1 + $0x2b8] sm:$0xff] }
  0x37   : > { %1690 = vmatpush3.msra.mxu1 %v1331_v51  ;;  %1656 = vmatprep.subr.mxu0 %v1314_v53  ;;  %v1339_v51 = vld [vmem:[%s2577_s1 + $0x228] sm:$0xff] }
  0x38   : > { %1691 = vmatprep.subr.mxu1 %v1330_v54  ;;  %1657 = vmatpush3.msra.mxu0 %v1314_v53  ;;  %v1356_v53 = vld [vmem:[%s2577_s1 + $0x2b0] sm:$0xff] }
  0x39   : > { %1692 = vmatpush3.msra.mxu1 %v1330_v54  ;;  %1658 = vmatprep.subr.mxu0 %v1313_v55  ;;  %v1338_v54 = vld [vmem:[%s2577_s1 + $0x220] sm:$0xff] }
  0x3a   : > { %1693 = vmatprep.subr.mxu1 %v1329_v56  ;;  %1659 = vmatpush3.msra.mxu0 %v1313_v55  ;;  %v1355_v55 = vld [vmem:[%s2577_s1 + $0x2a8] sm:$0xff] }
  0x3b   : > { %1694 = vmatpush3.msra.mxu1 %v1329_v56  ;;  %1660 = vmatprep.subr.mxu0 %v1312_v57  ;;  %v1337_v56 = vld [vmem:[%s2577_s1 + $0x218] sm:$0xff] }
  0x3c   : > { %1695 = vmatprep.subr.mxu1 %v1328_v58  ;;  %1661 = vmatpush3.msra.mxu0 %v1312_v57  ;;  %v1354_v57 = vld [vmem:[%s2577_s1 + $0x2a0] sm:$0xff] }
  0x3d   : > { %1696 = vmatpush3.msra.mxu1 %v1328_v58  ;;  %1662 = vmatprep.subr.mxu0 %v1311_v59  ;;  %v1336_v58 = vld [vmem:[%s2577_s1 + $0x210] sm:$0xff] }
  0x3e   : > { %1697 = vmatprep.subr.mxu1 %v1327_v60  ;;  %1663 = vmatpush3.msra.mxu0 %v1311_v59  ;;  %v1353_v59 = vld [vmem:[%s2577_s1 + $0x298] sm:$0xff] }
  0x3f   : > { %1698 = vmatpush3.msra.mxu1 %v1327_v60  ;;  %1664 = vmatprep.subr.mxu0 %v1310_v1  ;;  %v1335_v60 = vld [vmem:[%s2577_s1 + $0x208] sm:$0xff] }
  0x40   : > { %1699 = vmatprep.subr.mxu1 %v1326_v2  ;;  %1665 = vmatpush3.msra.mxu0 %v1310_v1  ;;  %v761_v1 = vrot.slane %v2163_v42, 2 }
  0x41   : > { %1700 = vmatpush3.msra.mxu1 %v1326_v2  ;;  %1666 = vmatprep.subr.mxu0 %v1309_v5  ;;  %v762_v2 = vrot.slane %v2174_v46, 2 }
  0x42   : > { %1701 = vmatprep.subr.mxu1 %v1325_v6  ;;  %1667 = vmatpush3.msra.mxu0 %v1309_v5  ;;  %v1380_v5 = vld [vmem:[%s2577_s1 + $0x370] sm:$0xff] }
  0x43   : > { %1702 = vmatpush3.msra.mxu1 %v1325_v6  ;;  %1668 = vmatprep.subr.mxu0 %v1308_v9  ;;  %v2399_v46 = vsel %vm464_vm1, %v761_v1, %v762_v2  ;;  %v1397_v6 = vld [vmem:[%s2577_s1 + $0x3f8] sm:$0xff] }
  0x44   : > { %1703 = vmatprep.subr.mxu1 %v1324_v10  ;;  %1669 = vmatpush3.msra.mxu0 %v1308_v9  ;;  %v1396_v9 = vld [vmem:[%s2577_s1 + $0x3f0] sm:$0xff] }
  0x45   : > { %1704 = vmatpush3.msra.mxu1 %v1324_v10  ;;  %1670 = vmatprep.subr.mxu0 %v1307_v11  ;;  %v1378_v10 = vld [vmem:[%s2577_s1 + $0x360] sm:$0xff] }
  0x46   : > { %1705 = vmatprep.subr.mxu1 %v1323_v12  ;;  %1671 = vmatpush3.msra.mxu0 %v1307_v11  ;;  %v1395_v11 = vld [vmem:[%s2577_s1 + $0x3e8] sm:$0xff] }
  0x47   : > { %1706 = vmatpush3.msra.mxu1 %v1323_v12  ;;  %1672 = vmatprep.subr.mxu0 %v1306_v13  ;;  %v1377_v12 = vld [vmem:[%s2577_s1 + $0x358] sm:$0xff] }
  0x48   : > { %1707 = vmatprep.subr.mxu1 %v1322_v14  ;;  %1673 = vmatpush3.msra.mxu0 %v1306_v13  ;;  %v1394_v13 = vld [vmem:[%s2577_s1 + $0x3e0] sm:$0xff] }
  0x49   : > { %1708 = vmatpush3.msra.mxu1 %v1322_v14  ;;  %1674 = vmatprep.subr.mxu0 %v1305_v15  ;;  %v1376_v14 = vld [vmem:[%s2577_s1 + $0x350] sm:$0xff] }
  0x4a   : > { %1709 = vmatprep.subr.mxu1 %v1321_v16  ;;  %1675 = vmatpush3.msra.mxu0 %v1305_v15  ;;  %v1393_v15 = vld [vmem:[%s2577_s1 + $0x3d8] sm:$0xff] }
  0x4b   : > { %1710 = vmatpush3.msra.mxu1 %v1321_v16  ;;  %1676 = vmatprep.subr.mxu0 %v1304_v19  ;;  %v1375_v16 = vld [vmem:[%s2577_s1 + $0x348] sm:$0xff] }
  0x4c   : > { %1711 = vmatprep.subr.mxu1 %v1320_v20  ;;  %1677 = vmatpush3.msra.mxu0 %v1304_v19  ;;  %v1391_v19 = vld [vmem:[%s2577_s1 + $0x3c8] sm:$0xff] }
  0x4d   : > { %1712 = vmatpush3.msra.mxu1 %v1320_v20  ;;  %1678 = vmatprep.subr.mxu0 %v1303_v21  ;;  %v1373_v20 = vld [vmem:[%s2577_s1 + $0x338] sm:$0xff] }
  0x4e   : > { %1713 = vmatprep.subr.mxu1 %v1319_v22  ;;  %1679 = vmatpush3.msra.mxu0 %v1303_v21  ;;  %v1390_v21 = vld [vmem:[%s2577_s1 + $0x3c0] sm:$0xff] }
  0x4f   : > { %1682 = vmatprep.mubr.f32.mxu0 %v467_v25  ;;  %1680 = vmatprep.subr.mxu0 %v1302_v26  ;;  %v1388_v25 = vld [vmem:[%s2577_s1 + $0x3b0] sm:$0xff] }
  0x50   : > { %1714 = vmatpush3.msra.mxu1 %v1319_v22  ;;  %1681 = vmatpush3.msra.mxu0 %v1302_v26  ;;  %v1372_v22 = vld [vmem:[%s2577_s1 + $0x330] sm:$0xff]  ;;  %v1370_v26 = vld [vmem:[%s2577_s1 + $0x320] sm:$0xff] }
  0x51   : > { %1715 = vmatprep.subr.mxu1 %v1318_v27  ;;  %1683 = vmatmul.mubr.f32.vlgmr.msra.gmra.mxu0 %v2290_v28 }
  0x52   : > { %1720 = vmatprep.subr.mxu0 %v1349_v29  ;;  %1716 = vmatpush3.msra.mxu1 %v1318_v27  ;;  %v1387_v27 = vld [vmem:[%s2577_s1 + $0x3a8] sm:$0xff] }
  0x53   : > { %1717 = vmatprep.mubr.f32.mxu1 %v2137_v30  ;;  %1721 = vmatpush3.msra.mxu0 %v1349_v29  ;;  %v1363_v30 = vld [vmem:[%s2577_s1 + $0x2e8] sm:$0xff]  ;;  %v1386_v29 = vld [vmem:[%s2577_s1 + $0x3a0] sm:$0xff] }
  0x54   : > { %1718 = vmatmul.mubr.f32.vlgmr.msra.gmra.mxu1 %v2163_v42  ;;  %1722 = vmatprep.subr.mxu0 %v1348_v31 }
  0x55   : > { %1755 = vmatprep.subr.mxu1 %v1365_v32  ;;  %1723 = vmatpush3.msra.mxu0 %v1348_v31  ;;  %v1368_v31 = vld [vmem:[%s2577_s1 + $0x310] sm:$0xff] }
  0x56   : > { %1756 = vmatpush3.msra.mxu1 %v1365_v32  ;;  %1724 = vmatprep.subr.mxu0 %v1347_v33  ;;  %v1385_v32 = vld [vmem:[%s2577_s1 + $0x398] sm:$0xff] }
  0x57   : > { %1757 = vmatprep.subr.mxu1 %v1364_v34  ;;  %1725 = vmatpush3.msra.mxu0 %v1347_v33  ;;  %v1367_v33 = vld [vmem:[%s2577_s1 + $0x308] sm:$0xff] }
  0x58   : > { %1758 = vmatpush3.msra.mxu1 %v1364_v34  ;;  %1726 = vmatprep.subr.mxu0 %v1346_v35  ;;  %v1384_v34 = vld [vmem:[%s2577_s1 + $0x390] sm:$0xff] }
  0x59   : > { %1759 = vmatprep.subr.mxu1 %v1363_v30  ;;  %1727 = vmatpush3.msra.mxu0 %v1346_v35  ;;  %v1366_v35 = vld [vmem:[%s2577_s1 + $0x300] sm:$0xff] }
  0x5a   : > { %1760 = vmatpush3.msra.mxu1 %v1363_v30  ;;  %1728 = vmatprep.subr.mxu0 %v1345_v36  ;;  %v1383_v30 = vld [vmem:[%s2577_s1 + $0x388] sm:$0xff] }
  0x5b   : > { %1761 = vmatprep.subr.mxu1 %v1362_v37  ;;  %1729 = vmatpush3.msra.mxu0 %v1345_v36  ;;  %v1382_v36 = vld [vmem:[%s2577_s1 + $0x380] sm:$0xff] }
  0x5c   : > { %1762 = vmatpush3.msra.mxu1 %v1362_v37  ;;  %1730 = vmatprep.subr.mxu0 %v1344_v38  ;;  %v1413_v37 = vld [vmem:[%s2577_s1 + $0x478] sm:$0xff] }
  0x5d   : > { %1763 = vmatprep.subr.mxu1 %v1361_v39  ;;  %1731 = vmatpush3.msra.mxu0 %v1344_v38  ;;  %v1412_v38 = vld [vmem:[%s2577_s1 + $0x470] sm:$0xff] }
  0x5e   : > { %1764 = vmatpush3.msra.mxu1 %v1361_v39  ;;  %1732 = vmatprep.subr.mxu0 %v1343_v40  ;;  %v1411_v39 = vld [vmem:[%s2577_s1 + $0x468] sm:$0xff] }
  0x5f   : > { %1765 = vmatprep.subr.mxu1 %v1360_v43  ;;  %1733 = vmatpush3.msra.mxu0 %v1343_v40  ;;  %v1406_v40 = vld [vmem:[%s2577_s1 + $0x440] sm:$0xff] }
  0x60   : > { %1766 = vmatpush3.msra.mxu1 %v1360_v43  ;;  %1734 = vmatprep.subr.mxu0 %v1342_v44  ;;  %v1405_v43 = vld [vmem:[%s2577_s1 + $0x438] sm:$0xff] }
  0x61   : > { %1767 = vmatprep.subr.mxu1 %v1359_v45  ;;  %1735 = vmatpush3.msra.mxu0 %v1342_v44  ;;  %v1404_v44 = vld [vmem:[%s2577_s1 + $0x430] sm:$0xff] }
  0x62   : > { %1768 = vmatpush3.msra.mxu1 %v1359_v45  ;;  %1736 = vmatprep.subr.mxu0 %v1341_v47  ;;  %v1403_v45 = vld [vmem:[%s2577_s1 + $0x428] sm:$0xff] }
  0x63   : > { %1769 = vmatprep.subr.mxu1 %v1358_v48  ;;  %1737 = vmatpush3.msra.mxu0 %v1341_v47  ;;  %v1402_v47 = vld [vmem:[%s2577_s1 + $0x420] sm:$0xff] }
  0x64   : > { %1770 = vmatpush3.msra.mxu1 %v1358_v48  ;;  %1738 = vmatprep.subr.mxu0 %v1340_v49  ;;  %v1401_v48 = vld [vmem:[%s2577_s1 + $0x418] sm:$0xff] }
  0x65   : > { %1771 = vmatprep.subr.mxu1 %v1357_v50  ;;  %1739 = vmatpush3.msra.mxu0 %v1340_v49  ;;  %v1400_v49 = vld [vmem:[%s2577_s1 + $0x410] sm:$0xff] }
  0x66   : > { %1772 = vmatpush3.msra.mxu1 %v1357_v50  ;;  %1740 = vmatprep.subr.mxu0 %v1339_v51  ;;  %v1399_v50 = vld [vmem:[%s2577_s1 + $0x408] sm:$0xff] }
  0x67   : > { %1773 = vmatprep.subr.mxu1 %v1356_v53  ;;  %1741 = vmatpush3.msra.mxu0 %v1339_v51  ;;  %v1398_v51 = vld [vmem:[%s2577_s1 + $0x400] sm:$0xff] }
  0x68   : > { %1774 = vmatpush3.msra.mxu1 %v1356_v53  ;;  %1742 = vmatprep.subr.mxu0 %v1338_v54 }
  0x69   : > { %1775 = vmatprep.subr.mxu1 %v1355_v55  ;;  %1743 = vmatpush3.msra.mxu0 %v1338_v54 }
  0x6a   : > { %1776 = vmatpush3.msra.mxu1 %v1355_v55  ;;  %1744 = vmatprep.subr.mxu0 %v1337_v56 }
  0x6b   : > { %1777 = vmatprep.subr.mxu1 %v1354_v57  ;;  %1745 = vmatpush3.msra.mxu0 %v1337_v56 }
  0x6c   : > { %1778 = vmatpush3.msra.mxu1 %v1354_v57  ;;  %1746 = vmatprep.subr.mxu0 %v1336_v58 }
  0x6d   : > { %1779 = vmatprep.subr.mxu1 %v1353_v59  ;;  %1747 = vmatpush3.msra.mxu0 %v1336_v58 }
  0x6e   : > { %1780 = vmatpush3.msra.mxu1 %v1353_v59  ;;  %1748 = vmatprep.subr.mxu0 %v1335_v60 }
  0x6f   : > { %1781 = vmatprep.subr.mxu1 %v1352_v62  ;;  %1749 = vmatpush3.msra.mxu0 %v1335_v60 }
  0x70   : > { %1782 = vmatpush3.msra.mxu1 %v1352_v62  ;;  %1750 = vmatprep.subr.mxu0 %v1334_v63 }
  0x71   : > { %1783 = vmatprep.subr.mxu1 %v1351_v0  ;;  %1751 = vmatpush3.msra.mxu0 %v1334_v63 }
  0x72   : > { %1752 = vmatprep.mubr.f32.mxu0 %v2160_v41  ;;  %1784 = vmatpush3.msra.mxu1 %v1351_v0  ;;  %v1379_v41 = vld [vmem:[%s2577_s1 + $0x368] sm:$0xff] }
  0x73   : > { %1753 = vmatmul.mubr.f32.vlgmr.msra.gmra.mxu0 %v2192_v52  ;;  %1785 = vmatprep.subr.mxu1 %v1350_v3 }
  0x74   : > { %1790 = vmatprep.subr.mxu0 %v1381_v4  ;;  %1786 = vmatpush3.msra.mxu1 %v1350_v3 }
  0x75   : > { %1787 = vmatprep.mubr.f32.mxu1 %v2290_v28  ;;  %1791 = vmatpush3.msra.mxu0 %v1381_v4  ;;  %v1369_v28 = vld [vmem:[%s2577_s1 + $0x318] sm:$0xff] }
  0x76   : > { %1788 = vmatmul.mubr.f32.vlgmr.msra.gmra.mxu1 %v2399_v46  ;;  %1792 = vmatprep.subr.mxu0 %v1380_v5 }
  0x77   : > { %1825 = vmatprep.subr.mxu1 %v1397_v6  ;;  %1793 = vmatpush3.msra.mxu0 %v1380_v5 }
  0x78   : > { %1826 = vmatpush3.msra.mxu1 %v1397_v6  ;;  %1794 = vmatprep.subr.mxu0 %v1379_v41 }
  0x79   : > { %1827 = vmatprep.subr.mxu1 %v1396_v9  ;;  %1795 = vmatpush3.msra.mxu0 %v1379_v41 }
  0x7a   : > { %1828 = vmatpush3.msra.mxu1 %v1396_v9  ;;  %1796 = vmatprep.subr.mxu0 %v1378_v10 }
  0x7b   : > { %1829 = vmatprep.subr.mxu1 %v1395_v11  ;;  %1797 = vmatpush3.msra.mxu0 %v1378_v10 }
  0x7c   : > { %1830 = vmatpush3.msra.mxu1 %v1395_v11  ;;  %1798 = vmatprep.subr.mxu0 %v1377_v12 }
  0x7d   : > { %1831 = vmatprep.subr.mxu1 %v1394_v13  ;;  %1799 = vmatpush3.msra.mxu0 %v1377_v12 }
  0x7e   : > { %1832 = vmatpush3.msra.mxu1 %v1394_v13  ;;  %1800 = vmatprep.subr.mxu0 %v1376_v14 }
  0x7f   : > { %1833 = vmatprep.subr.mxu1 %v1393_v15  ;;  %1801 = vmatpush3.msra.mxu0 %v1376_v14 }
  0x80   : > { %1834 = vmatpush3.msra.mxu1 %v1393_v15  ;;  %1802 = vmatprep.subr.mxu0 %v1375_v16 }
  0x81   : > { %1835 = vmatprep.subr.mxu1 %v1392_v17  ;;  %1803 = vmatpush3.msra.mxu0 %v1375_v16 }
  0x82   : > { %1836 = vmatpush3.msra.mxu1 %v1392_v17  ;;  %1804 = vmatprep.subr.mxu0 %v1374_v18 }
  0x83   : > { %1837 = vmatprep.subr.mxu1 %v1391_v19  ;;  %1805 = vmatpush3.msra.mxu0 %v1374_v18 }
  0x84   : > { %1838 = vmatpush3.msra.mxu1 %v1391_v19  ;;  %1806 = vmatprep.subr.mxu0 %v1373_v20  ;;  %v1414_v19 = vld [vmem:[%s2578_s2] ss:$0 sm:$0xff] }
  0x85   : > { %1839 = vmatprep.subr.mxu1 %v1390_v21  ;;  %1807 = vmatpush3.msra.mxu0 %v1373_v20 }
  0x86   : > { %1840 = vmatpush3.msra.mxu1 %v1390_v21  ;;  %1808 = vmatprep.subr.mxu0 %v1372_v22 }
  0x87   : > { %1841 = vmatprep.subr.mxu1 %v1389_v23  ;;  %1809 = vmatpush3.msra.mxu0 %v1372_v22  ;;  %v1161_v22 = vld [vmem:[%s245_s12 + $0x8] sm:$0xff] }
  0x88   : > { %1842 = vmatpush3.msra.mxu1 %v1389_v23  ;;  %1810 = vmatprep.subr.mxu0 %v1371_v24 }
  0x89   : > { %1843 = vmatprep.subr.mxu1 %v1388_v25  ;;  %1811 = vmatpush3.msra.mxu0 %v1371_v24 }
  0x8a   : > { %1844 = vmatpush3.msra.mxu1 %v1388_v25  ;;  %1812 = vmatprep.subr.mxu0 %v1370_v26 }
  0x8b   : > { %1845 = vmatprep.subr.mxu1 %v1387_v27  ;;  %1813 = vmatpush3.msra.mxu0 %v1370_v26  ;;  %v1160_v26 = vld [vmem:[%s245_s12] sm:$0xff] }
  0x8c   : > { %1846 = vmatpush3.msra.mxu1 %v1387_v27  ;;  %1814 = vmatprep.subr.mxu0 %v1369_v28 }
  0x8d   : > { %1847 = vmatprep.subr.mxu1 %v1386_v29  ;;  %1815 = vmatpush3.msra.mxu0 %v1369_v28 }
  0x8e   : > { %1848 = vmatpush3.msra.mxu1 %v1386_v29  ;;  %1816 = vmatprep.subr.mxu0 %v1368_v31 }
  0x8f   : > { %1849 = vmatprep.subr.mxu1 %v1385_v32  ;;  %1817 = vmatpush3.msra.mxu0 %v1368_v31 }
  0x90   : > { %1850 = vmatpush3.msra.mxu1 %v1385_v32  ;;  %1818 = vmatprep.subr.mxu0 %v1367_v33 }
  0x91   : > { %1851 = vmatprep.subr.mxu1 %v1384_v34  ;;  %1819 = vmatpush3.msra.mxu0 %v1367_v33 }
  0x92   : > { %1852 = vmatpush3.msra.mxu1 %v1384_v34  ;;  %1820 = vmatprep.subr.mxu0 %v1366_v35 }
  0x93   : > { %1853 = vmatprep.subr.mxu1 %v1383_v30  ;;  %1821 = vmatpush3.msra.mxu0 %v1366_v35 }
  0x94   : > { %1822 = vmatprep.mubr.f32.mxu0 %v2163_v42  ;;  %1854 = vmatpush3.msra.mxu1 %v1383_v30  ;;  %v1410_v42 = vld [vmem:[%s2577_s1 + $0x460] sm:$0xff] }
  0x95   : > { %1823 = vmatmul.mubr.f32.vlgmr.msra.gmra.mxu0 %v2219_v61  ;;  %1855 = vmatprep.subr.mxu1 %v1382_v36  ;;  %v1408_v61 = vld [vmem:[%s2577_s1 + $0x450] sm:$0xff] }
  0x96   : > { %1860 = vmatprep.subr.mxu0 %v1413_v37  ;;  %1856 = vmatpush3.msra.mxu1 %v1382_v36 }
  0x97   : > { %1857 = vmatprep.mubr.f32.mxu1 %v2192_v52  ;;  %1861 = vmatpush3.msra.mxu0 %v1413_v37  ;;  %v1409_v52 = vld [vmem:[%s2577_s1 + $0x458] sm:$0xff] }
  0x98   : > { %1858 = vmatmul.mubr.f32.vlgmr.msra.gmra.mxu1 %v2237_v7  ;;  %1862 = vmatprep.subr.mxu0 %v1412_v38  ;;  %v1407_v7 = vld [vmem:[%s2577_s1 + $0x448] sm:$0xff] }
  0x99   : > { %1892 = vmatprep.mubr.f32.mxu0 %v2399_v46  ;;  %1863 = vmatpush3.msra.mxu0 %v1412_v38 }
  0x9a   : > { %1864 = vmatprep.subr.mxu0 %v1411_v39 }
  0x9b   : > { %1865 = vmatpush3.msra.mxu0 %v1411_v39 }
  0x9c   : > { %1866 = vmatprep.subr.mxu0 %v1410_v42 }
  0x9d   : > { %1867 = vmatpush3.msra.mxu0 %v1410_v42 }
  0x9e   : > { %1868 = vmatprep.subr.mxu0 %v1409_v52 }
  0x9f   : > { %1869 = vmatpush3.msra.mxu0 %v1409_v52 }
  0xa0   : > { %1870 = vmatprep.subr.mxu0 %v1408_v61 }
  0xa1   : > { %1871 = vmatpush3.msra.mxu0 %v1408_v61 }
  0xa2   : > { %1872 = vmatprep.subr.mxu0 %v1407_v7 }
  0xa3   : > { %1873 = vmatpush3.msra.mxu0 %v1407_v7 }
  0xa4   : > { %1874 = vmatprep.subr.mxu0 %v1406_v40 }
  0xa5   : > { %1875 = vmatpush3.msra.mxu0 %v1406_v40 }
  0xa6   : > { %1876 = vmatprep.subr.mxu0 %v1405_v43 }
  0xa7   : > { %1877 = vmatpush3.msra.mxu0 %v1405_v43 }
  0xa8   : > { %1878 = vmatprep.subr.mxu0 %v1404_v44 }
  0xa9   : > { %1879 = vmatpush3.msra.mxu0 %v1404_v44 }
  0xaa   : > { %1880 = vmatprep.subr.mxu0 %v1403_v45 }
  0xab   : > { %1881 = vmatpush3.msra.mxu0 %v1403_v45 }
  0xac   : > { %1882 = vmatprep.subr.mxu0 %v1402_v47 }
  0xad   : > { %1883 = vmatpush3.msra.mxu0 %v1402_v47 }
  0xae   : > { %1884 = vmatprep.subr.mxu0 %v1401_v48 }
  0xaf   : > { %1885 = vmatpush3.msra.mxu0 %v1401_v48 }
  0xb0   : > { %1886 = vmatprep.subr.mxu0 %v1400_v49 }
  0xb1   : > { %1887 = vmatpush3.msra.mxu0 %v1400_v49 }
  0xb2   : > { %1888 = vmatprep.subr.mxu0 %v1399_v50 }
  0xb3   : > { %1889 = vmatpush3.msra.mxu0 %v1399_v50 }
  0xb4   : > { %1890 = vmatprep.subr.mxu0 %v1398_v51 }
  0xb5   : > { %1891 = vmatpush3.msra.mxu0 %v1398_v51 }
  0xb6   : > { %1893 = vmatmul.mubr.f32.vlgmr.msra.gmra.mxu0 %v2240_v8 }
  0xf0   : > { %v1614_v53 = vpop.f32.mrf.mxu0 }
  0xf1   : > { %v1649_v54 = vpop.f32.mrf.mxu1 }
  0xf2   : > { %v380_v55 = vpop.f32.mrf.mxu0  ;;  %v461_v58 = vadd.f32 %v1649_v54, %v1614_v53 }
  0xf3   : > { %v455_v57 = vpop.f32.mrf.mxu1 }
  0xf4   : > { %v456_v62 = vadd.f32 %v455_v57, %v380_v55 }
 0x111   : > { %v1684_v56 = vpop.f32.mrf.mxu0 }
 0x112   : > { %v566_v63 = vadd.f32 %v1684_v56, %v461_v58 }
 0x113   : > { %v556_v59 = vpop.f32.mrf.mxu0 }
 0x114   : > { %v1719_v60 = vpop.f32.mrf.mxu1  ;;  %v565_v1 = vadd.f32 %v556_v59, %v456_v62 }
 0x115   : > { %v660_v3 = vadd.f32 %v1719_v60, %v566_v63 }
 0x116   : > { %v650_v2 = vpop.f32.mrf.mxu1 }
 0x117   : > { %v659_v8 = vadd.f32 %v650_v2, %v565_v1 }
 0x133   : > { %v1754_v0 = vpop.f32.mrf.mxu0 }
 0x134   : > { %v760_v5 = vadd.f32 %v1754_v0, %v660_v3 }
 0x135   : > { %v750_v4 = vpop.f32.mrf.mxu0 }
 0x136   : > { %v1789_v46 = vpop.f32.mrf.mxu1  ;;  %v759_v41 = vadd.f32 %v750_v4, %v659_v8 }
 0x137   : > { %v858_v10 = vadd.f32 %v1789_v46, %v760_v5 }
 0x138   : > { %v848_v9 = vpop.f32.mrf.mxu1 }
 0x139   : > { %v857_v13 = vadd.f32 %v848_v9, %v759_v41 }
 0x155   : > { %v1824_v6 = vpop.f32.mrf.mxu0 }
 0x156   : > { %v952_v14 = vadd.f32 %v1824_v6, %v858_v10 }
 0x157   : > { %v942_v11 = vpop.f32.mrf.mxu0 }
 0x158   : > { %v1859_v12 = vpop.f32.mrf.mxu1  ;;  %v951_v15 = vadd.f32 %v942_v11, %v857_v13 }
 0x159   : > { %v1052_v17 = vadd.f32 %v1859_v12, %v952_v14 }
 0x15a   : > { %v1042_v16 = vpop.f32.mrf.mxu1 }
 0x15b   : > { %v1051_v20 = vadd.f32 %v1042_v16, %v951_v15 }
 0x176   : > { %v1894_v18 = vpop.f32.mrf.mxu0 }
 0x177   : > { %v1150_v21 = vadd.f32 %v1894_v18, %v1052_v17 }
 0x178   : > { %v1140_v23 = vpop.f32.mrf.mxu0 }
 0x179   : > { %v1159_v24 = vadd.f32 %v1414_v19, %v1150_v21  ;;  %v1149_v25 = vadd.f32 %v1140_v23, %v1051_v20 }
 0x17b   : > { %v1163_v27 = vadd.f32 %v1161_v22, %v1159_v24  ;;  %v1158_v28 = vadd.f32 %v1414_v19, %v1149_v25 }
 0x17d   : > { %v1165_v29 = vmax.f32 %v1163_v27, 0.0  ;;  %v1162_v31 = vadd.f32 %v1160_v26, %v1158_v28 }
 0x17f   : > { %1167 = vst [vmem:[%s255_s23 + $0x8] sm:$0xff] %v1165_v29  ;;  %v1164_v32 = vmax.f32 %v1162_v31, 0.0 }
 0x181   : > { %1166 = vst [vmem:[%s255_s23] sm:$0xff] %v1164_v32 }
 0x182 PF: > { %s14_s19 = sadd.s32 1, %s1974_s19   ;;  %s2581_s15 = smov %s1966_s17 }
 0x183   : > { %p11_p7 = scmp.ge.s32.totalorder %s14_s19, 10   ;;  %s2582_s16 = smov %s1970_s18 }
 0x184   : > { %s2583_s17 = smov %s2586_s20  ;;  %s2584_s18 = smov %s2590_s21 }
 0x185   :  { %13 = sbr.rel (!%p11_p7) target bundleno = 3 (0x3), region = 78 }

</bundles_post_ra>
